<compile_context>
chip_gen: v7x
topology: tpu7x:2x2x1
jax: 0.10.0
libtpu: 0.0.40
codegen_flags: <defaults>
</compile_context>

<pallas_src>
import functools

import numpy as np
import jax
import jax.numpy as jnp
from jax.experimental import pallas as pl
from jax.experimental.pallas import tpu as pltpu


# ----------------------------------------------------------------------------
# Shape-only helper matrices (host side, cached per (H, W, pool_size))
# ----------------------------------------------------------------------------
def _pool_matrix(in_size, k):
    """avg_pool1d with kernel=k, stride=k, pad=0 as a (P, in_size) matrix."""
    p = (in_size - k) // k + 1
    A = np.zeros((p, in_size), dtype=np.float32)
    for i in range(p):
        A[i, i * k:(i + 1) * k] = 1.0 / k
    return A


def _upsample_matrix(out_size, in_size):
    """Bilinear interp (align_corners=False) as an (out_size, in_size) matrix."""
    U = np.zeros((out_size, in_size), dtype=np.float32)
    scale = in_size / out_size
    for o in range(out_size):
        src = max((o + 0.5) * scale - 0.5, 0.0)
        i0 = int(np.floor(src))
        i1 = min(i0 + 1, in_size - 1)
        frac = src - i0
        U[o, i0] += 1.0 - frac
        U[o, i1] += frac
    return U


@functools.lru_cache(maxsize=None)
def _path_matrices(H, W, pool_size):
    """Kronecker pool / upsample matrices for one pyramid path (cached)."""
    k = H // pool_size                       # module: int(h / pool_size), both axes
    Ah, Aw = _pool_matrix(H, k), _pool_matrix(W, k)
    Hp, Wp = Ah.shape[0], Aw.shape[0]
    A = np.kron(Ah, Aw)                                              # (Hp*Wp, H*W)
    U = np.kron(_upsample_matrix(H, Hp), _upsample_matrix(W, Wp))    # (H*W, Hp*Wp)
    return A, U, Hp * Wp


def _round_up(x, m):
    return (x + m - 1) // m * m


def _pick_hw_tile(HW, max_tile):
    """Largest multiple of 128 <= max_tile that divides HW (else the full HW)."""
    best = None
    t = 128
    while t <= min(max_tile, HW):
        if HW % t == 0:
            best = t
        t += 128
    return best if best is not None else HW


def _compiler_params(dimension_semantics):
    kwargs = dict(dimension_semantics=dimension_semantics)
    try:
        cap = pltpu.get_tpu_info().vmem_capacity_bytes
        # leave headroom for Mosaic internal scratch; cap at 100 MiB on 128 MiB parts
        kwargs["vmem_limit_bytes"] = int(min(cap - 12 * 1024 * 1024,
                                             100 * 1024 * 1024))
    except Exception:
        pass  # fall back to the compiler's default scoped-VMEM limit
    return pltpu.CompilerParams(**kwargs)


def _const_spec(shape):
    """BlockSpec for a grid-invariant operand: single-buffer it (VMEM saver)."""
    idx = lambda n, t: (0,) * len(shape)
    if hasattr(pl, "Buffered"):
        try:
            return pl.BlockSpec(shape, idx, pipeline_mode=pl.Buffered(1))
        except TypeError:
            pass
    return pl.BlockSpec(shape, idx)


# ----------------------------------------------------------------------------
# Pass 1: stacked average-pool reduction over HW tiles + 1x1 conv (BN folded) + ReLU
# ----------------------------------------------------------------------------
def _make_pool_conv_kernel(path_meta, n_tiles):
    """Ref order: x, A_all, (wT, b) per path, then per-path y outputs, then acc."""
    P = len(path_meta)

    def kernel(x_ref, a_ref, *rest):
        wb_refs = rest[:2 * P]
        y_refs = rest[2 * P:3 * P]
        acc_ref = rest[3 * P]
        t = pl.program_id(1)

        @pl.when(t == 0)
        def _():
            acc_ref[...] = jnp.zeros_like(acc_ref)

        # Partial spatial average pool for ALL paths in one stacked matmul:
        # (R, T) @ (T, C) accumulated over HW tiles.
        acc_ref[...] += jnp.dot(a_ref[...], x_ref[0],
                                preferred_element_type=jnp.float32)

        @pl.when(t == n_tiles - 1)
        def _():
            for p, (off, hpwp) in enumerate(path_meta):
                w = wb_refs[2 * p][...]           # (C, Co)
                b = wb_refs[2 * p + 1][...]       # (1, Co)
                pooled = acc_ref[off:off + hpwp, :]          # (hpwp, C)
                y = jnp.maximum(
                    jnp.dot(pooled, w, preferred_element_type=jnp.float32) + b,
                    0.0)
                y_refs[p][0] = y

    return kernel


# ----------------------------------------------------------------------------
# Pass 2: per-HW-tile identity copy + bilinear upsample + channel-offset stores
# ----------------------------------------------------------------------------
def _make_upsample_kernel(C, Co, T, path_hpwp):
    """Ref order: x, (U, y) per path, output slab."""

    def kernel(x_ref, *rest):
        o_ref = rest[-1]
        uy_refs = rest[:-1]

        # identity slice (exact f32 passthrough), lane offset 0
        o_ref[0, :, 0:C] = x_ref[0]

        for p, hpwp in enumerate(path_hpwp):
            u_ref = uy_refs[2 * p]
            y = uy_refs[2 * p + 1][0]                         # (hpwp, Co)
            if hpwp == 1:
                # global-pool path: 1x1 -> HxW is a pure broadcast
                out = jnp.broadcast_to(y, (T, Co))
            else:
                out = jnp.dot(u_ref[...], y,                  # (T, hpwp)@(hpwp, Co)
                              preferred_element_type=jnp.float32)
            lo = C + p * Co
            o_ref[0, :, lo:lo + Co] = out                     # slice store per path

    return kernel


# ----------------------------------------------------------------------------
# Module wrappers
# ----------------------------------------------------------------------------
def init_params(key, in_channels, n_paths):
    """conv2DBatchNormRelu params (1x1 conv, no bias) with BN folded (eval)."""
    co = in_channels // n_paths
    eps = 1e-5
    params = []
    for _ in range(n_paths):
        key, k1, k2, k3, k4, k5 = jax.random.split(key, 6)
        w = jax.random.normal(k1, (co, in_channels), jnp.float32) * 0.1
        gamma = 1.0 + 0.1 * jax.random.normal(k2, (co,), jnp.float32)
        beta = 0.1 * jax.random.normal(k3, (co,), jnp.float32)
        mean = 0.1 * jax.random.normal(k4, (co,), jnp.float32)
        var = 1.0 + 0.1 * jnp.abs(jax.random.normal(k5, (co,), jnp.float32))
        scale = gamma / jnp.sqrt(var + eps)
        w_fused = w * scale[:, None]                 # (Co, C)
        b_fused = (beta - mean * scale)[:, None]     # (Co, 1)
        params.append((w_fused, b_fused))
    return params


def pyramid_pooling_nhwc(x_nhwc, params, pool_sizes, *, max_hw_tile=512):
    """Channels-last entry point: (N, H, W, C) -> (N, H, W, C + P*Co)."""
    N, H, W, C = x_nhwc.shape
    HW = H * W
    P = len(pool_sizes)
    Co = params[0][0].shape[0]
    C_total = C + P * Co
    T = _pick_hw_tile(HW, max_hw_tile)
    n_t = HW // T

    x_flat = x_nhwc.reshape(N, HW, C)    # free: channels already minor-most

    # Stacked pool matrix (8-aligned per-path row offsets) + per-path upsample.
    path_meta, A_rows, U_list = [], [], []
    off = 0
    for ps in pool_sizes:
        A_np, U_np, hpwp = _path_matrices(H, W, int(ps))
        path_meta.append((off, hpwp))
        hp_pad = _round_up(hpwp, 8)
        A_pad = np.zeros((hp_pad, HW), np.float32)
        A_pad[:hpwp] = A_np
        A_rows.append(A_pad)
        U_list.append(jnp.asarray(U_np, dtype=jnp.float32))           # (HW, hpwp)
        off += hp_pad
    R = off
    A_all = jnp.asarray(np.concatenate(A_rows, axis=0))               # (R, HW)

    wTs = [jnp.asarray(w).T.astype(jnp.float32) for (w, _) in params]     # (C, Co)
    bs = [jnp.asarray(b).reshape(1, -1).astype(jnp.float32) for (_, b) in params]

    # -------- pass 1: pool (tiled reduction) + conv + ReLU -> tiny per-path y ----
    in1 = [x_flat, A_all]
    specs1 = [
        pl.BlockSpec((1, T, C), lambda n, t: (n, t, 0)),
        pl.BlockSpec((R, T), lambda n, t: (0, t)),
    ]
    for wT, b in zip(wTs, bs):
        in1 += [wT, b]
        specs1 += [_const_spec(wT.shape), _const_spec(b.shape)]

    y_shapes = tuple(jax.ShapeDtypeStruct((N, hpwp, Co), jnp.float32)
                     for (_, hpwp) in path_meta)
    y_specs = tuple(pl.BlockSpec((1, hpwp, Co), lambda n, t: (n, 0, 0))
                    for (_, hpwp) in path_meta)

    ys = pl.pallas_call(
        _make_pool_conv_kernel(tuple(path_meta), n_t),
        out_shape=y_shapes,
        grid=(N, n_t),
        in_specs=specs1,
        out_specs=y_specs,
        scratch_shapes=[pltpu.VMEM((R, C), jnp.float32)],
        compiler_params=_compiler_params(("parallel", "arbitrary")),
    )(*in1)

    # -------- pass 2: identity + per-path upsample + channel-offset stores -------
    in2 = [x_flat]
    specs2 = [pl.BlockSpec((1, T, C), lambda n, t: (n, t, 0))]
    for p, (_, hpwp) in enumerate(path_meta):
        in2 += [U_list[p], ys[p]]
        specs2 += [
            pl.BlockSpec((T, hpwp), lambda n, t: (t, 0)),
            pl.BlockSpec((1, hpwp, Co), lambda n, t: (n, 0, 0)),
        ]

    out_flat = pl.pallas_call(
        _make_upsample_kernel(C, Co, T, tuple(h for _, h in path_meta)),
        out_shape=jax.ShapeDtypeStruct((N, HW, C_total), jnp.float32),
        grid=(N, n_t),
        in_specs=specs2,
        out_specs=pl.BlockSpec((1, T, C_total), lambda n, t: (n, t, 0)),
        compiler_params=_compiler_params(("parallel", "parallel")),
    )(*in2)

    return out_flat.reshape(N, H, W, C_total)


def pyramid_pooling(x_nchw, params, pool_sizes, *, max_hw_tile=512):
    """NCHW compatibility shim matching the PyTorch module's interface.

    The two transposes below are pure layout plumbing; in a real NHWC pipeline
    call pyramid_pooling_nhwc directly (saves a full HBM read+write each way).
    """
    x_nhwc = jnp.transpose(x_nchw, (0, 2, 3, 1))
    out_nhwc = pyramid_pooling_nhwc(x_nhwc, params, pool_sizes,
                                    max_hw_tile=max_hw_tile)
    return jnp.transpose(out_nhwc, (0, 3, 1, 2))


# ----------------------------------------------------------------------------
# Pure-JAX reference (f32, NCHW, independent einsum path)
# ----------------------------------------------------------------------------
def reference(x, params, pool_sizes):
    N, C, H, W = x.shape
    outs = [x]
    for (w_fused, b_fused), ps in zip(params, pool_sizes):
        k = H // int(ps)
        Hp, Wp = (H - k) // k + 1, (W - k) // k + 1
        pooled = x[:, :, :Hp * k, :Wp * k].reshape(N, C, Hp, k, Wp, k).mean(axis=(3, 5))
        y = jnp.einsum('oc,ncpq->nopq', w_fused, pooled) \
            + b_fused.reshape(1, -1, 1, 1)
        y = jnp.maximum(y, 0.0)
        Uh = jnp.asarray(_upsample_matrix(H, Hp))
        Uw = jnp.asarray(_upsample_matrix(W, Wp))
        up = jnp.einsum('yp,xq,nopq->noyx', Uh, Uw, y)
        outs.append(up)
    return jnp.concatenate(outs, axis=1)


if __name__ == "__main__":
    key = jax.random.PRNGKey(0)
    kx, kp = jax.random.split(key)

    N, C, H, W = 2, 8, 16, 16
    pool_sizes = (1, 2, 4, 8)          # canonical PSP pyramid

    x = jax.random.normal(kx, (N, C, H, W), jnp.float32)
    params = init_params(kp, C, len(pool_sizes))

    # max_hw_tile=128 -> HW=256 split into 2 spatial tiles, exercising the tiled
    # reduction / tiled-store path that production shapes rely on.
    out = jax.block_until_ready(
        pyramid_pooling(x, params, pool_sizes, max_hw_tile=128))
    ref = jax.block_until_ready(reference(x, params, pool_sizes))

    C_out = C + len(pool_sizes) * (C // len(pool_sizes))
    assert out.shape == (N, C_out, H, W)
    assert out.dtype == jnp.float32
    # tolerance covers the backend's default MXU precision for f32 matmuls
    np.testing.assert_allclose(np.asarray(out), np.asarray(ref),
                               rtol=2e-2, atol=2e-2)
    print("KERNEL_OK")
</pallas_src>

<mosaic_0001>
module attributes {stable_mosaic.version = 11 : i64} {
  func.func @kernel(%arg0: i32, %arg1: i32, %arg2: memref<1x128x8xf32, #tpu.memory_space<vmem>>, %arg3: memref<96x128xf32, #tpu.memory_space<vmem>>, %arg4: memref<8x2xf32, #tpu.memory_space<vmem>>, %arg5: memref<1x2xf32, #tpu.memory_space<vmem>>, %arg6: memref<8x2xf32, #tpu.memory_space<vmem>>, %arg7: memref<1x2xf32, #tpu.memory_space<vmem>>, %arg8: memref<8x2xf32, #tpu.memory_space<vmem>>, %arg9: memref<1x2xf32, #tpu.memory_space<vmem>>, %arg10: memref<8x2xf32, #tpu.memory_space<vmem>>, %arg11: memref<1x2xf32, #tpu.memory_space<vmem>>, %arg12: memref<1x1x2xf32, #tpu.memory_space<vmem>>, %arg13: memref<1x4x2xf32, #tpu.memory_space<vmem>>, %arg14: memref<1x16x2xf32, #tpu.memory_space<vmem>>, %arg15: memref<1x64x2xf32, #tpu.memory_space<vmem>>, %arg16: memref<96x8xf32, #tpu.memory_space<vmem>>) attributes {dimension_semantics = [#tpu.dimension_semantics<parallel>, #tpu.dimension_semantics<arbitrary>], iteration_bounds = array<i64: 2, 2>, scalar_prefetch = 0 : i64, scratch_operands = 1 : i64, tpu.core_type = #tpu.core_type<tc>, window_params = [{transform_indices = @transform_0, window_bounds = array<i64: 1, 128, 8>}, {transform_indices = @transform_1, window_bounds = array<i64: 96, 128>}, {pipeline_mode = #tpu.pipeline_mode<synchronous>, transform_indices = @transform_2, window_bounds = array<i64: 8, 2>}, {pipeline_mode = #tpu.pipeline_mode<synchronous>, transform_indices = @transform_3, window_bounds = array<i64: 1, 2>}, {pipeline_mode = #tpu.pipeline_mode<synchronous>, transform_indices = @transform_4, window_bounds = array<i64: 8, 2>}, {pipeline_mode = #tpu.pipeline_mode<synchronous>, transform_indices = @transform_5, window_bounds = array<i64: 1, 2>}, {pipeline_mode = #tpu.pipeline_mode<synchronous>, transform_indices = @transform_6, window_bounds = array<i64: 8, 2>}, {pipeline_mode = #tpu.pipeline_mode<synchronous>, transform_indices = @transform_7, window_bounds = array<i64: 1, 2>}, {pipeline_mode = #tpu.pipeline_mode<synchronous>, transform_indices = @transform_8, window_bounds = array<i64: 8, 2>}, {pipeline_mode = #tpu.pipeline_mode<synchronous>, transform_indices = @transform_9, window_bounds = array<i64: 1, 2>}, {transform_indices = @transform_10, window_bounds = array<i64: 1, 1, 2>}, {transform_indices = @transform_11, window_bounds = array<i64: 1, 4, 2>}, {transform_indices = @transform_12, window_bounds = array<i64: 1, 16, 2>}, {transform_indices = @transform_13, window_bounds = array<i64: 1, 64, 2>}]} {
    %c0_i32 = arith.constant 0 : i32
    %0 = arith.cmpi eq, %arg1, %c0_i32 : i32
    %1 = arith.extui %0 : i1 to i32
    %c0_i32_0 = arith.constant 0 : i32
    %2 = arith.cmpi ne, %1, %c0_i32_0 : i32
    scf.if %2 {
      %cst_10 = arith.constant 0.000000e+00 : f32
      %13 = vector.broadcast %cst_10 : f32 to vector<96x8xf32>
      %c0_11 = arith.constant 0 : index
      %c0_12 = arith.constant 0 : index
      %14 = vector.load %arg16[%c0_11, %c0_12] : memref<96x8xf32, #tpu.memory_space<vmem>>, vector<96x8xf32>
      tpu.vector_store %arg16[%c0_11, %c0_12], %13 {strides = array<i32>} : memref<96x8xf32, #tpu.memory_space<vmem>>, vector<96x8xf32>,
    } else {
    }
    %c0 = arith.constant 0 : index
    %c0_1 = arith.constant 0 : index
    %3 = vector.load %arg16[%c0, %c0_1] : memref<96x8xf32, #tpu.memory_space<vmem>>, vector<96x8xf32>
    %c0_2 = arith.constant 0 : index
    %c0_3 = arith.constant 0 : index
    %4 = vector.load %arg3[%c0_2, %c0_3] : memref<96x128xf32, #tpu.memory_space<vmem>>, vector<96x128xf32>
    %c0_4 = arith.constant 0 : index
    %c0_5 = arith.constant 0 : index
    %c0_6 = arith.constant 0 : index
    %5 = vector.load %arg2[%c0_4, %c0_5, %c0_6] : memref<1x128x8xf32, #tpu.memory_space<vmem>>, vector<1x128x8xf32>
    %6 = vector.shape_cast %5 : vector<1x128x8xf32> to vector<128x8xf32>
    %cst = arith.constant dense<0.000000e+00> : vector<96x8xf32>
    %7 = tpu.matmul %4, %6, %cst {dimension_numbers = #tpu.dot_dimension_numbers<[1], [0], [0], [1], [0, 0, 1, 1], [], []>} : vector<96x128xf32>, vector<128x8xf32>, vector<96x8xf32> -> vector<96x8xf32>
    %8 = arith.addf %3, %7 : vector<96x8xf32>
    %c0_7 = arith.constant 0 : index
    %c0_8 = arith.constant 0 : index
    %9 = vector.load %arg16[%c0_7, %c0_8] : memref<96x8xf32, #tpu.memory_space<vmem>>, vector<96x8xf32>
    tpu.vector_store %arg16[%c0_7, %c0_8], %8 {strides = array<i32>} : memref<96x8xf32, #tpu.memory_space<vmem>>, vector<96x8xf32>,
    %c1_i32 = arith.constant 1 : i32
    %10 = arith.cmpi eq, %arg1, %c1_i32 : i32
    %11 = arith.extui %10 : i1 to i32
    %c0_i32_9 = arith.constant 0 : i32
    %12 = arith.cmpi ne, %11, %c0_i32_9 : i32
    scf.if %12 {
      %c0_10 = arith.constant 0 : index
      %c0_11 = arith.constant 0 : index
      %13 = vector.load %arg4[%c0_10, %c0_11] : memref<8x2xf32, #tpu.memory_space<vmem>>, vector<8x2xf32>
      %c0_12 = arith.constant 0 : index
      %c0_13 = arith.constant 0 : index
      %14 = vector.load %arg5[%c0_12, %c0_13] : memref<1x2xf32, #tpu.memory_space<vmem>>, vector<1x2xf32>
      %c0_14 = arith.constant 0 : index
      %c0_15 = arith.constant 0 : index
      %15 = vector.load %arg16[%c0_14, %c0_15] : memref<96x8xf32, #tpu.memory_space<vmem>>, vector<1x8xf32>
      %cst_16 = arith.constant dense<0.000000e+00> : vector<1x2xf32>
      %16 = tpu.matmul %15, %13, %cst_16 {dimension_numbers = #tpu.dot_dimension_numbers<[1], [0], [0], [1], [0, 0, 1, 1], [], []>} : vector<1x8xf32>, vector<8x2xf32>, vector<1x2xf32> -> vector<1x2xf32>
      %17 = arith.addf %16, %14 : vector<1x2xf32>
      %cst_17 = arith.constant 0.000000e+00 : f32
      %18 = vector.broadcast %cst_17 : f32 to vector<1x2xf32>
      %19 = arith.maximumf %17, %18 : vector<1x2xf32>
      %c0_18 = arith.constant 0 : index
      %c0_19 = arith.constant 0 : index
      %c0_20 = arith.constant 0 : index
      %20 = vector.load %arg12[%c0_18, %c0_19, %c0_20] : memref<1x1x2xf32, #tpu.memory_space<vmem>>, vector<1x1x2xf32>
      %21 = vector.shape_cast %20 : vector<1x1x2xf32> to vector<1x2xf32>
      %22 = vector.shape_cast %19 : vector<1x2xf32> to vector<1x1x2xf32>
      tpu.vector_store %arg12[%c0_18, %c0_19, %c0_20], %22 {strides = array<i32>} : memref<1x1x2xf32, #tpu.memory_space<vmem>>, vector<1x1x2xf32>,
      %c0_21 = arith.constant 0 : index
      %c0_22 = arith.constant 0 : index
      %23 = vector.load %arg6[%c0_21, %c0_22] : memref<8x2xf32, #tpu.memory_space<vmem>>, vector<8x2xf32>
      %c0_23 = arith.constant 0 : index
      %c0_24 = arith.constant 0 : index
      %24 = vector.load %arg7[%c0_23, %c0_24] : memref<1x2xf32, #tpu.memory_space<vmem>>, vector<1x2xf32>
      %c8 = arith.constant 8 : index
      %c0_25 = arith.constant 0 : index
      %25 = vector.load %arg16[%c8, %c0_25] : memref<96x8xf32, #tpu.memory_space<vmem>>, vector<4x8xf32>
      %cst_26 = arith.constant dense<0.000000e+00> : vector<4x2xf32>
      %26 = tpu.matmul %25, %23, %cst_26 {dimension_numbers = #tpu.dot_dimension_numbers<[1], [0], [0], [1], [0, 0, 1, 1], [], []>} : vector<4x8xf32>, vector<8x2xf32>, vector<4x2xf32> -> vector<4x2xf32>
      %27 = vector.broadcast %24 : vector<1x2xf32> to vector<4x2xf32>
      %28 = arith.addf %26, %27 : vector<4x2xf32>
      %cst_27 = arith.constant 0.000000e+00 : f32
      %29 = vector.broadcast %cst_27 : f32 to vector<4x2xf32>
      %30 = arith.maximumf %28, %29 : vector<4x2xf32>
      %c0_28 = arith.constant 0 : index
      %c0_29 = arith.constant 0 : index
      %c0_30 = arith.constant 0 : index
      %31 = vector.load %arg13[%c0_28, %c0_29, %c0_30] : memref<1x4x2xf32, #tpu.memory_space<vmem>>, vector<1x4x2xf32>
      %32 = vector.shape_cast %31 : vector<1x4x2xf32> to vector<4x2xf32>
      %33 = vector.shape_cast %30 : vector<4x2xf32> to vector<1x4x2xf32>
      tpu.vector_store %arg13[%c0_28, %c0_29, %c0_30], %33 {strides = array<i32>} : memref<1x4x2xf32, #tpu.memory_space<vmem>>, vector<1x4x2xf32>,
      %c0_31 = arith.constant 0 : index
      %c0_32 = arith.constant 0 : index
      %34 = vector.load %arg8[%c0_31, %c0_32] : memref<8x2xf32, #tpu.memory_space<vmem>>, vector<8x2xf32>
      %c0_33 = arith.constant 0 : index
      %c0_34 = arith.constant 0 : index
      %35 = vector.load %arg9[%c0_33, %c0_34] : memref<1x2xf32, #tpu.memory_space<vmem>>, vector<1x2xf32>
      %c16 = arith.constant 16 : index
      %c0_35 = arith.constant 0 : index
      %36 = vector.load %arg16[%c16, %c0_35] : memref<96x8xf32, #tpu.memory_space<vmem>>, vector<16x8xf32>
      %cst_36 = arith.constant dense<0.000000e+00> : vector<16x2xf32>
      %37 = tpu.matmul %36, %34, %cst_36 {dimension_numbers = #tpu.dot_dimension_numbers<[1], [0], [0], [1], [0, 0, 1, 1], [], []>} : vector<16x8xf32>, vector<8x2xf32>, vector<16x2xf32> -> vector<16x2xf32>
      %38 = vector.broadcast %35 : vector<1x2xf32> to vector<16x2xf32>
      %39 = arith.addf %37, %38 : vector<16x2xf32>
      %cst_37 = arith.constant 0.000000e+00 : f32
      %40 = vector.broadcast %cst_37 : f32 to vector<16x2xf32>
      %41 = arith.maximumf %39, %40 : vector<16x2xf32>
      %c0_38 = arith.constant 0 : index
      %c0_39 = arith.constant 0 : index
      %c0_40 = arith.constant 0 : index
      %42 = vector.load %arg14[%c0_38, %c0_39, %c0_40] : memref<1x16x2xf32, #tpu.memory_space<vmem>>, vector<1x16x2xf32>
      %43 = vector.shape_cast %42 : vector<1x16x2xf32> to vector<16x2xf32>
      %44 = vector.shape_cast %41 : vector<16x2xf32> to vector<1x16x2xf32>
      tpu.vector_store %arg14[%c0_38, %c0_39, %c0_40], %44 {strides = array<i32>} : memref<1x16x2xf32, #tpu.memory_space<vmem>>, vector<1x16x2xf32>,
      %c0_41 = arith.constant 0 : index
      %c0_42 = arith.constant 0 : index
      %45 = vector.load %arg10[%c0_41, %c0_42] : memref<8x2xf32, #tpu.memory_space<vmem>>, vector<8x2xf32>
      %c0_43 = arith.constant 0 : index
      %c0_44 = arith.constant 0 : index
      %46 = vector.load %arg11[%c0_43, %c0_44] : memref<1x2xf32, #tpu.memory_space<vmem>>, vector<1x2xf32>
      %c32 = arith.constant 32 : index
      %c0_45 = arith.constant 0 : index
      %47 = vector.load %arg16[%c32, %c0_45] : memref<96x8xf32, #tpu.memory_space<vmem>>, vector<64x8xf32>
      %cst_46 = arith.constant dense<0.000000e+00> : vector<64x2xf32>
      %48 = tpu.matmul %47, %45, %cst_46 {dimension_numbers = #tpu.dot_dimension_numbers<[1], [0], [0], [1], [0, 0, 1, 1], [], []>} : vector<64x8xf32>, vector<8x2xf32>, vector<64x2xf32> -> vector<64x2xf32>
      %49 = vector.broadcast %46 : vector<1x2xf32> to vector<64x2xf32>
      %50 = arith.addf %48, %49 : vector<64x2xf32>
      %cst_47 = arith.constant 0.000000e+00 : f32
      %51 = vector.broadcast %cst_47 : f32 to vector<64x2xf32>
      %52 = arith.maximumf %50, %51 : vector<64x2xf32>
      %c0_48 = arith.constant 0 : index
      %c0_49 = arith.constant 0 : index
      %c0_50 = arith.constant 0 : index
      %53 = vector.load %arg15[%c0_48, %c0_49, %c0_50] : memref<1x64x2xf32, #tpu.memory_space<vmem>>, vector<1x64x2xf32>
      %54 = vector.shape_cast %53 : vector<1x64x2xf32> to vector<64x2xf32>
      %55 = vector.shape_cast %52 : vector<64x2xf32> to vector<1x64x2xf32>
      tpu.vector_store %arg15[%c0_48, %c0_49, %c0_50], %55 {strides = array<i32>} : memref<1x64x2xf32, #tpu.memory_space<vmem>>, vector<1x64x2xf32>,
    } else {
    }
    return
  }
  func.func @transform_0(%arg0: i32, %arg1: i32) -> (i32, i32, i32) {
    %c0_i32 = arith.constant 0 : i32
    %c0_i32_0 = arith.constant 0 : i32
    return %arg0, %arg1, %c0_i32 : i32, i32, i32
  }
  func.func @transform_1(%arg0: i32, %arg1: i32) -> (i32, i32) {
    %c0_i32 = arith.constant 0 : i32
    %c0_i32_0 = arith.constant 0 : i32
    return %c0_i32, %arg1 : i32, i32
  }
  func.func @transform_2(%arg0: i32, %arg1: i32) -> (i32, i32) {
    %c0_i32 = arith.constant 0 : i32
    %c0_i32_0 = arith.constant 0 : i32
    %c0_i32_1 = arith.constant 0 : i32
    return %c0_i32, %c0_i32_0 : i32, i32
  }
  func.func @transform_3(%arg0: i32, %arg1: i32) -> (i32, i32) {
    %c0_i32 = arith.constant 0 : i32
    %c0_i32_0 = arith.constant 0 : i32
    %c0_i32_1 = arith.constant 0 : i32
    return %c0_i32, %c0_i32_0 : i32, i32
  }
  func.func @transform_4(%arg0: i32, %arg1: i32) -> (i32, i32) {
    %c0_i32 = arith.constant 0 : i32
    %c0_i32_0 = arith.constant 0 : i32
    %c0_i32_1 = arith.constant 0 : i32
    return %c0_i32, %c0_i32_0 : i32, i32
  }
  func.func @transform_5(%arg0: i32, %arg1: i32) -> (i32, i32) {
    %c0_i32 = arith.constant 0 : i32
    %c0_i32_0 = arith.constant 0 : i32
    %c0_i32_1 = arith.constant 0 : i32
    return %c0_i32, %c0_i32_0 : i32, i32
  }
  func.func @transform_6(%arg0: i32, %arg1: i32) -> (i32, i32) {
    %c0_i32 = arith.constant 0 : i32
    %c0_i32_0 = arith.constant 0 : i32
    %c0_i32_1 = arith.constant 0 : i32
    return %c0_i32, %c0_i32_0 : i32, i32
  }
  func.func @transform_7(%arg0: i32, %arg1: i32) -> (i32, i32) {
    %c0_i32 = arith.constant 0 : i32
    %c0_i32_0 = arith.constant 0 : i32
    %c0_i32_1 = arith.constant 0 : i32
    return %c0_i32, %c0_i32_0 : i32, i32
  }
  func.func @transform_8(%arg0: i32, %arg1: i32) -> (i32, i32) {
    %c0_i32 = arith.constant 0 : i32
    %c0_i32_0 = arith.constant 0 : i32
    %c0_i32_1 = arith.constant 0 : i32
    return %c0_i32, %c0_i32_0 : i32, i32
  }
  func.func @transform_9(%arg0: i32, %arg1: i32) -> (i32, i32) {
    %c0_i32 = arith.constant 0 : i32
    %c0_i32_0 = arith.constant 0 : i32
    %c0_i32_1 = arith.constant 0 : i32
    return %c0_i32, %c0_i32_0 : i32, i32
  }
  func.func @transform_10(%arg0: i32, %arg1: i32) -> (i32, i32, i32) {
    %c0_i32 = arith.constant 0 : i32
    %c0_i32_0 = arith.constant 0 : i32
    %c0_i32_1 = arith.constant 0 : i32
    return %arg0, %c0_i32, %c0_i32_0 : i32, i32, i32
  }
  func.func @transform_11(%arg0: i32, %arg1: i32) -> (i32, i32, i32) {
    %c0_i32 = arith.constant 0 : i32
    %c0_i32_0 = arith.constant 0 : i32
    %c0_i32_1 = arith.constant 0 : i32
    return %arg0, %c0_i32, %c0_i32_0 : i32, i32, i32
  }
  func.func @transform_12(%arg0: i32, %arg1: i32) -> (i32, i32, i32) {
    %c0_i32 = arith.constant 0 : i32
    %c0_i32_0 = arith.constant 0 : i32
    %c0_i32_1 = arith.constant 0 : i32
    return %arg0, %c0_i32, %c0_i32_0 : i32, i32, i32
  }
  func.func @transform_13(%arg0: i32, %arg1: i32) -> (i32, i32, i32) {
    %c0_i32 = arith.constant 0 : i32
    %c0_i32_0 = arith.constant 0 : i32
    %c0_i32_1 = arith.constant 0 : i32
    return %arg0, %c0_i32, %c0_i32_0 : i32, i32, i32
  }
}

</mosaic_0001>

<bundles_post_ra>
// kernel: tpu_custom_call.1
= control target key start
LH: loop header
LB: loop body
LE: loop exit
PB: predicated region body
PF: predicated region fallthrough
CT: control target
= control target key end

     0   :  { %s2207_s0 = inlined_call_operand.vmem [shape: f32[2,256,8], index: 0, kind: input, shape index: {}]   ;;  %s2208_s1 = inlined_call_operand.vmem [shape: f32[96,256], index: 1, kind: input, shape index: {}]   ;;  %s2209_s2 = inlined_call_operand.vmem [shape: f32[8,2], index: 2, kind: input, shape index: {}]   ;;  %s2210_s3 = inlined_call_operand.vmem [shape: f32[1,2], index: 3, kind: input, shape index: {}]   ;;  %s2211_s4 = inlined_call_operand.vmem [shape: f32[8,2], index: 4, kind: input, shape index: {}]   ;;  %s2212_s5 = inlined_call_operand.vmem [shape: f32[1,2], index: 5, kind: input, shape index: {}]   ;;  %s2213_s6 = inlined_call_operand.vmem [shape: f32[8,2], index: 6, kind: input, shape index: {}]   ;;  %s2214_s7 = inlined_call_operand.vmem [shape: f32[1,2], index: 7, kind: input, shape index: {}]   ;;  %s2215_s8 = inlined_call_operand.vmem [shape: f32[8,2], index: 8, kind: input, shape index: {}]   ;;  %s2216_s9 = inlined_call_operand.vmem [shape: f32[1,2], index: 9, kind: input, shape index: {}]   ;;  %s2217_s10 = inlined_call_operand.hbm [shape: f32[2,1,2], index: 10, kind: output, shape index: {0}]   ;;  %s2218_s11 = inlined_call_operand.vmem [shape: f32[2,4,2], index: 11, kind: output, shape index: {1}]   ;;  %s2219_s12 = inlined_call_operand.vmem [shape: f32[2,16,2], index: 12, kind: output, shape index: {2}]   ;;  %s2220_s13 = inlined_call_operand.vmem [shape: f32[2,64,2], index: 13, kind: output, shape index: {3}]  }
   0x1   :  { %2234 = sst [smem:[#allocation19_spill]] %s2208_s1 }
   0x2   :  { %2235 = sst [smem:[#allocation20_spill]] %s2210_s3 }
   0x3   :  { %2236 = sst [smem:[#allocation21_spill]] %s2212_s5 }
   0x4   :  { %2237 = sst [smem:[#allocation22_spill]] %s2214_s7 }
   0x5   :  { %2238 = sst [smem:[#allocation23_spill]] %s2217_s10 }
   0x6   :  { %19 = vsyncpa [#allocation5], 0 }
   0x7   :  { %21 = vsyncpa [#allocation5 + $0x1], 0  ;;  %s1916_s25 = smov 0   ;;  %s1918_s26 = smov 0  }
   0x8   :  { %s1920_s27 = smov 0   ;;  %s1922_s28 = smov 0  }
   0x9   :  { %s1924_s29 = smov 0   ;;  %s1926_s30 = smov 0  }
   0xa   :  { %s1928_s14 = smov 0   ;;  %s1930_s15 = smov 0  }
   0xb   :  { %s1932_s16 = smov 0   ;;  %s1934_s17 = smov 0  }
   0xc LB: > { %2239 = sst [smem:[#allocation7_spill]] %s1804_s25  ;;  %s1431_s18 = sadd.s32 4294967295, %s1840_s17   ;;  %s1840_s17 = sphi %s1934_s17, %s27_s17   ;;  %s1836_s16 = sphi %s1932_s16, %s2272_s16   ;;  %s1832_s15 = sphi %s1930_s15, %s2271_s15   ;;  %s1828_s14 = sphi %s1928_s14, %s2270_s14   ;;  %s1824_s30 = sphi %s1926_s30, %s2269_s30   ;;  %s1820_s29 = sphi %s1924_s29, %s2268_s29   ;;  %s1816_s28 = sphi %s1922_s28, %s2267_s28   ;;  %s1812_s27 = sphi %s1920_s27, %s2266_s27   ;;  %s1808_s26 = sphi %s1918_s26, %s2274_s26   ;;  %s1804_s25 = sphi %s1916_s25, %s2273_s25  }
   0xd   : > { %2240 = sst [smem:[#allocation8_spill]] %s1812_s27  ;;  %s1432_s19 = sadd.s32 4294967294, %s1840_s17  }
   0xe   : > { %2241 = sst [smem:[#allocation9_spill]] %s1820_s29  ;;  %s36_s20 = sadd.s32 1, %s1832_s15 }
   0xf   : > { %2242 = sst [smem:[#allocation10_spill]] %s1832_s15  ;;  %s39_s21 = sadd.s32 1, %s1836_s16 }
  0x10   : > { %2243 = sst [smem:[#allocation11_spill]] %s1836_s16  ;;  %p37_p0 = scmp.ge.s32.totalorder %s36_s20, 2 }
  0x11   : > { %2244 = sst [smem:[#allocation12_spill]] %s1840_s17  ;;  %s74_s22 = sadd.s32 1, %s1820_s29 }
  0x12   : > { %p81_p1 = scmp.ne.s32.totalorder %s1820_s29, %s1816_s28  ;;  %p82_p2 = scmp.eq.s32.totalorder %s1840_s17, 0 }
  0x13   : > { %s2276_s20 = smov (%p37_p0, %s36_s20), 0  ;;  %s2278_s21 = smov (!%p37_p0, %s39_s21), %s1836_s16 }
  0x14   : > { %2245 = sst [smem:[#allocation13_spill]] %s2276_s20  ;;  %s71_s23 = ssub.s32 %s1832_s15, %s2276_s20 }
  0x15   : > { %p1979_p3 = por %p82_p2, %p81_p1  ;;  %p41_p4 = scmp.ge.s32.totalorder %s2278_s21, 2 }
  0x16   : > { %p72_p5 = scmp.eq.s32.totalorder %s71_s23, 0  ;;  %s268_s10 = sadd.s32 1, %s1812_s27 }
  0x17   : > { %p278_p6 = scmp.ne.s32.totalorder %s1812_s27, %s1808_s26  ;;  %s2280_s21 = smov (%p41_p4, %s2278_s21), 0 }
  0x18   : > { %2247 = sst [smem:[#allocation14_spill]] %s2280_s21  ;;  %s265_s5 = ssub.s32 %s1836_s16, %s2280_s21 }
  0x19   : > { %s1989_s7 = scalar_select %p72_p5, %s1820_s29, %s74_s22  }
  0x1a   : > { %p279_p7 = scmp.eq.s32.totalorder %s1431_s18, 3  ;;  %p266_p8 = scmp.eq.s32.totalorder %s265_s5, 0 }
  0x1b   : > { %2248 = sst [smem:[#allocation15_spill]] %s1989_s7  ;;  %p284_p9 = scmp.ne.s32.totalorder %s1808_s26, %s1804_s25 }
  0x1c   : > { %p1995_p10 = por %p279_p7, %p278_p6  ;;  %p285_p11 = scmp.eq.s32.totalorder %s1432_s19, 3 }
  0x1d   : > { %s2000_s20 = scalar_select %p266_p8, %s1812_s27, %s268_s10  }
  0x1e   : > { %s2249_s3 = scalar_select %p1995_p10, 1, 0 }
  0x1f   : > { %2251 = sst [smem:[#allocation17_spill]] %s2000_s20  ;;  %p2002_p12 = por %p285_p11, %p284_p9 }
  0x20   : > { %2250 = sst [smem:[#allocation16_spill]] %s2249_s3  ;;  %p1434_p13 = scmp.ge.s32.totalorder %s1840_s17, 4 }
  0x21   : > { %s2252_s23 = scalar_select %p2002_p12, 1, 0 }
  0x22   : > { %403 = sbr.rel (%p1434_p13) target bundleno = 57 (0x39), region = 48 }
  0x23   : > { %2253 = sst [smem:[#allocation18_spill]] %s2252_s23 }
  0x29   : > { %419 = sbr.rel (!%p1979_p3) target bundleno = 57 (0x39), region = 56  ;;  %s421_s5 = sand.u32 (%p1979_p3), 1, %s1820_s29  }
  0x2a   : > { %s1435_s18 = sshll.u32 (%p1979_p3), %s1832_s15, 3  ;;  %s1638_s22 = smul.u32 (%p1979_p3), 96, %s421_s5 }
  0x2b   : > { %s2254_s1 = sld [smem:[#allocation19_spill]] (%p1979_p3) }
  0x2c   : > { %s423_s19 = scalar_lea.vmem (%p1979_p3), [#allocation3], %s1638_s22 }
  0x31   : > { %s425_s10 = scalar_lea.vmem %s2254_s1, %s1435_s18 }
  0x32   : > { %v475_v0 = vld [vmem:[%s425_s10] sm:$0xff]  ;;  %v477_v1 = vld [vmem:[%s425_s10 + $0x10] sm:$0xff] }
  0x33   : > { %v479_v2 = vld [vmem:[%s425_s10 + $0x20] sm:$0xff]  ;;  %v481_v3 = vld [vmem:[%s425_s10 + $0x30] sm:$0xff]  ;;  %476 = vst [vmem:[%s423_s19] sm:$0xff] %v475_v0  ;;  %478 = vst [vmem:[%s423_s19 + $0x8] sm:$0xff] %v477_v1 }
  0x34   : > { %v483_v4 = vld [vmem:[%s425_s10 + $0x40] sm:$0xff]  ;;  %v485_v5 = vld [vmem:[%s425_s10 + $0x50] sm:$0xff]  ;;  %480 = vst [vmem:[%s423_s19 + $0x10] sm:$0xff] %v479_v2  ;;  %482 = vst [vmem:[%s423_s19 + $0x18] sm:$0xff] %v481_v3 }
  0x35   : > { %484 = vst [vmem:[%s423_s19 + $0x20] sm:$0xff] %v483_v4  ;;  %486 = vst [vmem:[%s423_s19 + $0x28] sm:$0xff] %v485_v5  ;;  %v487_v6 = vld [vmem:[%s425_s10 + $0x60] sm:$0xff]  ;;  %v489_v7 = vld [vmem:[%s425_s10 + $0x70] sm:$0xff] }
  0x36   : > { %v491_v8 = vld [vmem:[%s425_s10 + $0x80] sm:$0xff]  ;;  %488 = vst [vmem:[%s423_s19 + $0x30] sm:$0xff] %v487_v6  ;;  %490 = vst [vmem:[%s423_s19 + $0x38] sm:$0xff] %v489_v7  ;;  %v493_v9 = vld [vmem:[%s425_s10 + $0x90] sm:$0xff] }
  0x37   : > { %492 = vst [vmem:[%s423_s19 + $0x40] sm:$0xff] %v491_v8  ;;  %v495_v10 = vld [vmem:[%s425_s10 + $0xa0] sm:$0xff]  ;;  %v497_v11 = vld [vmem:[%s425_s10 + $0xb0] sm:$0xff]  ;;  %494 = vst [vmem:[%s423_s19 + $0x48] sm:$0xff] %v493_v9 }
  0x38   : > { %496 = vst [vmem:[%s423_s19 + $0x50] sm:$0xff] %v495_v10  ;;  %498 = vst [vmem:[%s423_s19 + $0x58] sm:$0xff] %v497_v11 }
  0x39 PF: > { %p1436_p0 = scmp.ge.s32.totalorder %s1840_s17, 1  ;;  %p503_p1 = scmp.lt.s32.totalorder %s1840_s17, 5 }
  0x3b   : > { %p504_p2 = pnand %p1436_p0, %p503_p1 }
  0x3c   : > { %s510_s16 = sand.u32 (!%p504_p2), 1, %s1816_s28   ;;  %s1437_s5 = sshll.u32 (!%p504_p2), %s1824_s30, 4 }
  0x3d   : > { %507 = sbr.rel (%p504_p2) target bundleno = 600 (0x258), region = 94  ;;  %p576_p3 = scmp.lt.s32.totalorder (!%p504_p2), %s1828_s14, 1 }
  0x3e   : > { %s1639_s24 = smul.u32 (!%p504_p2), 96, %s510_s16  ;;  %p578_p4 = scmp.lt.s32.totalorder (!%p504_p2), %s1437_s5, 31 }
  0x3f   : > { %s2255_s15 = sand.u32 (!%p504_p2), 1, %s1808_s26   ;;  %p1445_p5 = scmp.ne.s32.totalorder (!%p504_p2), %s1824_s30, 0 }
  0x40   : > { %s2041_s1 = scalar_lea.vmem (!%p504_p2), [#allocation3], %s1639_s24 }
  0x44   : > { %s577_s18 = scalar_select %p576_p3, %s1828_s14, 1 }
  0x45   : > { %s2282_s5 = smov (!%p578_p4, %s1437_s5), 31  ;;  %602 = sbr.rel (%p1445_p5) target bundleno = 77 (0x4d), region = 102 }
  0x46   : > { %s1438_s22 = sshll.u32 %s577_s18, 5  ;;  %s1440_s10 = sshll.u32 %s577_s18, 2  ;;  %vm603_vm0 = vcmask (!%p1445_p5), 64512   ;;  %v1842_v12 = vmov (!%p1445_p5), 0.0  }
  0x47   : > { %s581_s19 = sadd.s32 %s1438_s22, %s2282_s5  ;;  %s2024_s7 = scalar_lea.vmem %s2218_s11, %s1440_s10  ;;  %604 = vst.msk [vmem:[#allocation2] sm:$0xff] (!%p1445_p5), %vm603_vm0, %v1842_v12  ;;  %605 = vst.msk [vmem:[#allocation2 + $0x8] sm:$0xff] (!%p1445_p5), %vm603_vm0, %v1842_v12 }
  0x48   : > { %s1439_s29 = sshll.u32 %s581_s19, 3  ;;  %s1465_s20 = sshll.u32 %s577_s18, 4  ;;  %606 = vst.msk [vmem:[#allocation2 + $0x10] sm:$0xff] (!%p1445_p5), %vm603_vm0, %v1842_v12  ;;  %607 = vst.msk [vmem:[#allocation2 + $0x18] sm:$0xff] (!%p1445_p5), %vm603_vm0, %v1842_v12 }
  0x49   : > { %s2029_s16 = scalar_lea.vmem %s2207_s0, %s1439_s29  ;;  %s2034_s25 = scalar_lea.vmem %s2219_s12, %s1465_s20  ;;  %608 = vst.msk [vmem:[#allocation2 + $0x20] sm:$0xff] (!%p1445_p5), %vm603_vm0, %v1842_v12  ;;  %609 = vst.msk [vmem:[#allocation2 + $0x28] sm:$0xff] (!%p1445_p5), %vm603_vm0, %v1842_v12 }
  0x4a   : > { %s1466_s17 = sshll.u32 %s577_s18, 6  ;;  %s2045_s10 = scalar_lea.vmem [#allocation4], %s2255_s15  ;;  %610 = vst.msk [vmem:[#allocation2 + $0x30] sm:$0xff] (!%p1445_p5), %vm603_vm0, %v1842_v12  ;;  %611 = vst.msk [vmem:[#allocation2 + $0x38] sm:$0xff] (!%p1445_p5), %vm603_vm0, %v1842_v12 }
  0x4b   : > { %s2039_s22 = scalar_lea.vmem %s2220_s13, %s1466_s17  ;;  %612 = vst.msk [vmem:[#allocation2 + $0x40] sm:$0xff] (!%p1445_p5), %vm603_vm0, %v1842_v12  ;;  %613 = vst.msk [vmem:[#allocation2 + $0x48] sm:$0xff] (!%p1445_p5), %vm603_vm0, %v1842_v12 }
  0x4c   : > { %614 = vst.msk [vmem:[#allocation2 + $0x50] sm:$0xff] %vm603_vm0, %v1842_v12  ;;  %615 = vst.msk [vmem:[#allocation2 + $0x58] sm:$0xff] %vm603_vm0, %v1842_v12 }
  0x4d PF: > { %v640_v13 = vld [vmem:[%s2029_s16] sm:$0xff]  ;;  %v641_v14 = vld [vmem:[%s2029_s16 + $0x8] sm:$0xff]  ;;  %v642_v15 = vld [vmem:[%s2029_s16 + $0x10] sm:$0xff]  ;;  %vm793_vm1 = vcmask 64512   ;;  %p1446_p6 = scmp.ne.s32.totalorder %s1824_s30, 1 }
  0x4e   : > { %v1590_v16 = vpack.c.bf16 %v641_v14, %v640_v13  ;;  %v643_v17 = vld [vmem:[%s2029_s16 + $0x18] sm:$0xff]  ;;  %v644_v19 = vld [vmem:[%s2029_s16 + $0x20] sm:$0xff]  ;;  %v645_v20 = vld [vmem:[%s2029_s16 + $0x28] sm:$0xff]  ;;  %vm1844_vm2 = vmmov (!%p1446_p6), 0   ;;  %vm1067_vm3 = vcmask (!%p1446_p6), 15360   ;;  %vm887_vm4 = vcmask (!%p1446_p6), 8192  }
  0x4f   : > { %v1594_v18 = vpack.c.bf16 %v643_v17, %v642_v15  ;;  %v1598_v21 = vpack.c.bf16 %v645_v20, %v644_v19  ;;  %v628_v22 = vld [vmem:[%s2041_s1] sm:$0xff]  ;;  %v634_v23 = vld [vmem:[%s2041_s1 + $0x30] sm:$0xff]  ;;  %v647_v25 = vld [vmem:[%s2029_s16 + $0x38] sm:$0xff]  ;;  %s2257_s15 = sld [smem:[#allocation21_spill]] (!%p1446_p6)  ;;  %vm972_vm5 = vcmask (!%p1446_p6), 11264   ;;  %s2258_s29 = sld [smem:[#allocation22_spill]] (!%p1446_p6) }
  0x50   : > { %1591 = vmatprep.subr.bf16.mxu0 %v1590_v16  ;;  %1622 = vmatprep.subr.bf16.mxu1 %v1590_v16  ;;  %v646_v24 = vld [vmem:[%s2029_s16 + $0x30] sm:$0xff]  ;;  %v648_v27 = vld [vmem:[%s2029_s16 + $0x40] sm:$0xff]  ;;  %v649_v28 = vld [vmem:[%s2029_s16 + $0x48] sm:$0xff] }
  0x51   : > { %1593 = vmatpush3.bf16.msra.mxu0 %v1590_v16  ;;  %1630 = vmatpush3.bf16.msra.mxu1 %v1590_v16  ;;  %v1602_v26 = vpack.c.bf16 %v647_v25, %v646_v24  ;;  %v1606_v29 = vpack.c.bf16 %v649_v28, %v648_v27  ;;  %v650_v30 = vld [vmem:[%s2029_s16 + $0x50] sm:$0xff]  ;;  %v651_v31 = vld [vmem:[%s2029_s16 + $0x58] sm:$0xff]  ;;  %v652_v33 = vld [vmem:[%s2029_s16 + $0x60] sm:$0xff]  ;;  %v1843_v25 = vmov (!%p1446_p6), 0.0  }
  0x52   : > { %1595 = vmatprep.subr.bf16.mxu0 %v1594_v18  ;;  %1623 = vmatprep.subr.bf16.mxu1 %v1594_v18  ;;  %v1610_v32 = vpack.c.bf16 %v651_v31, %v650_v30  ;;  %v653_v34 = vld [vmem:[%s2029_s16 + $0x68] sm:$0xff]  ;;  %v654_v36 = vld [vmem:[%s2029_s16 + $0x70] sm:$0xff]  ;;  %v655_v37 = vld [vmem:[%s2029_s16 + $0x78] sm:$0xff]  ;;  %s2256_s16 = sld [smem:[#allocation20_spill]] (!%p1446_p6) }
  0x53   : > { %1543 = vmatprep.mubr.f32.mxu0 %v628_v22  ;;  %1552 = vmatprep.mubr.f32.mxu1 %v634_v23  ;;  %v1614_v35 = vpack.c.bf16 %v653_v34, %v652_v33  ;;  %v1618_v38 = vpack.c.bf16 %v655_v37, %v654_v36  ;;  %v629_v39 = vld [vmem:[%s2041_s1 + $0x8] sm:$0xff]  ;;  %v635_v40 = vld [vmem:[%s2041_s1 + $0x38] sm:$0xff]  ;;  %v630_v41 = vld [vmem:[%s2041_s1 + $0x10] sm:$0xff] }
  0x54   : > { %v636_v42 = vld [vmem:[%s2041_s1 + $0x40] sm:$0xff]  ;;  %v631_v43 = vld [vmem:[%s2041_s1 + $0x18] sm:$0xff]  ;;  %v637_v44 = vld [vmem:[%s2041_s1 + $0x48] sm:$0xff] }
  0x55   : > { %1597 = vmatpush3.bf16.msra.mxu0 %v1594_v18  ;;  %1631 = vmatpush3.bf16.msra.mxu1 %v1594_v18  ;;  %v632_v45 = vld [vmem:[%s2041_s1 + $0x20] sm:$0xff]  ;;  %v638_v46 = vld [vmem:[%s2041_s1 + $0x50] sm:$0xff]  ;;  %v633_v47 = vld [vmem:[%s2041_s1 + $0x28] sm:$0xff] }
  0x56   : > { %1599 = vmatprep.subr.bf16.mxu0 %v1598_v21  ;;  %1624 = vmatprep.subr.bf16.mxu1 %v1598_v21  ;;  %v639_v48 = vld [vmem:[%s2041_s1 + $0x58] sm:$0xff]  ;;  %v617_v49 = vld [vmem:[#allocation2 + $0x8] sm:$0xff]  ;;  %v616_v51 = vld [vmem:[#allocation2] sm:$0xff] }
  0x57   : > { %v623_v50 = vld [vmem:[#allocation2 + $0x38] sm:$0xff]  ;;  %v622_v52 = vld [vmem:[#allocation2 + $0x30] sm:$0xff]  ;;  %v625_v62 = vld [vmem:[#allocation2 + $0x48] sm:$0xff] }
  0x58   : > { %v619_v61 = vld [vmem:[#allocation2 + $0x18] sm:$0xff]  ;;  %v618_v63 = vld [vmem:[#allocation2 + $0x10] sm:$0xff]  ;;  %v624_v0 = vld [vmem:[#allocation2 + $0x40] sm:$0xff] }
  0x59   : > { %1601 = vmatpush3.bf16.msra.mxu0 %v1598_v21  ;;  %1632 = vmatpush3.bf16.msra.mxu1 %v1598_v21  ;;  %v621_v9 = vld [vmem:[#allocation2 + $0x28] sm:$0xff]  ;;  %v627_v10 = vld [vmem:[#allocation2 + $0x58] sm:$0xff]  ;;  %v620_v11 = vld [vmem:[#allocation2 + $0x20] sm:$0xff] }
  0x5a   : > { %1603 = vmatprep.subr.bf16.mxu0 %v1602_v26  ;;  %1625 = vmatprep.subr.bf16.mxu1 %v1602_v26  ;;  %v626_v12 = vld [vmem:[#allocation2 + $0x50] sm:$0xff]  ;;  %v1070_v21 = vld [vmem:[%s2215_s8] sm:$0xff] (!%p1446_p6) }
  0x5b   : > { %v810_v24 = vld [vmem:[%s2209_s2] sm:$0xff] (!%p1446_p6) }
  0x5c   : > { %v889_v28 = vld [vmem:[%s2211_s4] sm:$0xff] (!%p1446_p6) }
  0x5d   : > { %1605 = vmatpush3.bf16.msra.mxu0 %v1602_v26  ;;  %1633 = vmatpush3.bf16.msra.mxu1 %v1602_v26  ;;  %v974_v30 = vld [vmem:[%s2213_s6] sm:$0xff] (!%p1446_p6) }
  0x5e   : > { %1607 = vmatprep.subr.bf16.mxu0 %v1606_v29  ;;  %1626 = vmatprep.subr.bf16.mxu1 %v1606_v29 }
  0x61   : > { %1609 = vmatpush3.bf16.msra.mxu0 %v1606_v29  ;;  %1634 = vmatpush3.bf16.msra.mxu1 %v1606_v29 }
  0x62   : > { %1611 = vmatprep.subr.bf16.mxu0 %v1610_v32  ;;  %1627 = vmatprep.subr.bf16.mxu1 %v1610_v32 }
  0x65   : > { %1613 = vmatpush3.bf16.msra.mxu0 %v1610_v32  ;;  %1635 = vmatpush3.bf16.msra.mxu1 %v1610_v32 }
  0x66   : > { %1615 = vmatprep.subr.bf16.mxu0 %v1614_v35  ;;  %1628 = vmatprep.subr.bf16.mxu1 %v1614_v35 }
  0x69   : > { %1617 = vmatpush3.bf16.msra.mxu0 %v1614_v35  ;;  %1636 = vmatpush3.bf16.msra.mxu1 %v1614_v35 }
  0x6a   : > { %1619 = vmatprep.subr.bf16.mxu0 %v1618_v38  ;;  %1629 = vmatprep.subr.bf16.mxu1 %v1618_v38 }
  0x6d   : > { %1621 = vmatpush3.bf16.msra.mxu0 %v1618_v38  ;;  %1637 = vmatpush3.bf16.msra.mxu1 %v1618_v38  ;;  %v1453_v38 = vld [vmem:[%s2216_s9] ss:$0 sm:$0xff] (!%p1446_p6) }
  0x6e   : > { %1576 = vmatprep.subr.mxu1 (!%p1446_p6), %v1070_v21  ;;  %1561 = vmatprep.subr.mxu0 (!%p1446_p6), %v1843_v25 }
  0x70   : > { %1544 = vmatmul.mubr.f32.vlgmr.msra.gmra.mrb[0].mxu0 %v629_v39  ;;  %1553 = vmatmul.mubr.f32.vlgmr.msra.gmra.mrb[0].mxu1 %v635_v40  ;;  %v811_v40 = vld [vmem:[%s2256_s16] sm:$0x1] (!%p1446_p6) }
  0x71   : > { %1546 = vmatprep.mubr.f32.mxu0 %v630_v41  ;;  %1555 = vmatprep.mubr.f32.mxu1 %v636_v42 }
  0x72   : > { %1577 = vmatpush3.msra.mxu1 (!%p1446_p6), %v1070_v21  ;;  %1562 = vmatpush3.msra.mxu0 (!%p1446_p6), %v810_v24 }
  0x73   : > { %1566 = vmatprep.subr.mxu0 (!%p1446_p6), %v1843_v25 }
  0x74   : > { %1547 = vmatmul.mubr.f32.gmra.mrb[2].mxu0 %v631_v43  ;;  %1556 = vmatmul.mubr.f32.gmra.mrb[2].mxu1 %v637_v44 }
  0x75   : > { %1549 = vmatprep.mubr.f32.mxu0 %v632_v45  ;;  %1558 = vmatprep.mubr.f32.mxu1 %v638_v46 }
  0x78   : > { %1550 = vmatmul.mubr.f32.gmra.mrb[4].mxu0 %v633_v47  ;;  %1559 = vmatmul.mubr.f32.gmra.mrb[4].mxu1 %v639_v48 }
  0x79   : > { %1563 = vmatprep.mubr.msk.f32.mxu0 (!%p1446_p6), %vm1844_vm2, %v1843_v25 }
 0x143   : > { %v1545_v53 = vpop.f32.mrb[0].mxu0  ;;  %v1554_v54 = vpop.f32.mrb[0].mxu1 }
 0x144   : > { %v782_v55 = vadd.f32 %v1545_v53, %v617_v49  ;;  %v788_v56 = vadd.f32 %v1554_v54, %v623_v50  ;;  %v722_v57 = vpop.f32.mrb[1].mxu0  ;;  %v752_v58 = vpop.f32.mrb[1].mxu1  ;;  %v1448_v50 = vld [vmem:[%s2257_s15] ss:$0 sm:$0xff] (!%p1446_p6) }
 0x145   : > { %v781_v59 = vadd.f32 %v722_v57, %v616_v51  ;;  %v787_v60 = vadd.f32 %v752_v58, %v622_v52 }
 0x146   : > { %795 = vst.msk [vmem:[#allocation2 + $0x8] sm:$0xff] %vm793_vm1, %v782_v55  ;;  %801 = vst.msk [vmem:[#allocation2 + $0x38] sm:$0xff] %vm793_vm1, %v788_v56 }
 0x147   : > { %794 = vst.msk [vmem:[#allocation2] sm:$0xff] %vm793_vm1, %v781_v59  ;;  %800 = vst.msk [vmem:[#allocation2 + $0x30] sm:$0xff] %vm793_vm1, %v787_v60  ;;  %v1548_v1 = vpop.f32.mrb[2].mxu0  ;;  %v1557_v2 = vpop.f32.mrb[2].mxu1 }
 0x148   : > { %v784_v3 = vadd.f32 %v1548_v1, %v619_v61  ;;  %v790_v4 = vadd.f32 %v1557_v2, %v625_v62  ;;  %v732_v5 = vpop.f32.mrb[3].mxu0  ;;  %v762_v6 = vpop.f32.mrb[3].mxu1  ;;  %v1450_v61 = vld [vmem:[%s2258_s29] ss:$0 sm:$0xff] (!%p1446_p6) }
 0x149   : > { %v783_v7 = vadd.f32 %v732_v5, %v618_v63  ;;  %v789_v8 = vadd.f32 %v762_v6, %v624_v0  ;;  %809 = sbr.rel (%p1446_p6) target bundleno = 574 (0x23e), region = 106 }
 0x14a   : > { %797 = vst.msk [vmem:[#allocation2 + $0x18] sm:$0xff] %vm793_vm1, %v784_v3  ;;  %803 = vst.msk [vmem:[#allocation2 + $0x48] sm:$0xff] %vm793_vm1, %v790_v4 }
 0x14b   : > { %796 = vst.msk [vmem:[#allocation2 + $0x10] sm:$0xff] %vm793_vm1, %v783_v7  ;;  %802 = vst.msk [vmem:[#allocation2 + $0x40] sm:$0xff] %vm793_vm1, %v789_v8  ;;  %v1551_v13 = vpop.f32.mrb[4].mxu0  ;;  %v1560_v14 = vpop.f32.mrb[4].mxu1 }
 0x14c   : > { %v786_v15 = vadd.f32 %v1551_v13, %v621_v9  ;;  %v792_v16 = vadd.f32 %v1560_v14, %v627_v10  ;;  %v742_v17 = vpop.f32.mrb[5].mxu0  ;;  %v772_v18 = vpop.f32.mrb[5].mxu1 }
 0x14d   : > { %v785_v19 = vadd.f32 %v742_v17, %v620_v11  ;;  %v791_v20 = vadd.f32 %v772_v18, %v626_v12  ;;  %v1075_v29 = vld [vmem:[#allocation2 + $0x38] sm:$0xff] (!%p1446_p6)  ;;  %v891_v32 = vld [vmem:[#allocation2 + $0x8] sm:$0xf] (!%p1446_p6) }
 0x14e   : > { %799 = vst.msk [vmem:[#allocation2 + $0x28] sm:$0xff] %vm793_vm1, %v786_v15  ;;  %805 = vst.msk [vmem:[#allocation2 + $0x58] sm:$0xff] %vm793_vm1, %v792_v16  ;;  %v812_v26 = vld [vmem:[#allocation2] sm:$0x1] (!%p1446_p6)  ;;  %v1074_v27 = vld [vmem:[#allocation2 + $0x30] sm:$0xff] (!%p1446_p6) }
 0x14f   : > { %798 = vst.msk [vmem:[#allocation2 + $0x20] sm:$0xff] %vm793_vm1, %v785_v19  ;;  %804 = vst.msk [vmem:[#allocation2 + $0x50] sm:$0xff] %vm793_vm1, %v791_v20  ;;  %1564 = vmatmul.mubr.msk.f32.vlgmr.msra.gmra.mrb[0].mxu0 (!%p1446_p6), %vm793_vm1, %v812_v26 }
 0x150   : > { %1567 = vmatpush3.msra.mxu0 %v889_v28  ;;  %1568 = vmatprep.mubr.msk.f32.mxu0 %vm1844_vm2, %v1843_v25 }
 0x151   : > { %1571 = vmatprep.subr.mxu0 %v974_v30  ;;  %v1077_v34 = vld [vmem:[#allocation2 + $0x48] sm:$0xff]  ;;  %v977_v36 = vld [vmem:[#allocation2 + $0x18] sm:$0xff] }
 0x152   : > { %v1076_v31 = vld [vmem:[#allocation2 + $0x40] sm:$0xff]  ;;  %v976_v33 = vld [vmem:[#allocation2 + $0x10] sm:$0xff] }
 0x153   : > { %1569 = vmatmul.mubr.msk.f32.vlgmr.msra.gmra.mrb[2].mxu0 %vm793_vm1, %v891_v32 }
 0x154   : > { %1572 = vmatpush3.msra.mxu0 %v974_v30  ;;  %1573 = vmatprep.mubr.msk.f32.mxu0 %vm793_vm1, %v976_v33 }
 0x155   : > { %v1073_v23 = vld [vmem:[#allocation2 + $0x28] sm:$0xff]  ;;  %v1079_v37 = vld [vmem:[#allocation2 + $0x58] sm:$0xff] }
 0x156   : > { %v1072_v22 = vld [vmem:[#allocation2 + $0x20] sm:$0xff]  ;;  %v1078_v35 = vld [vmem:[#allocation2 + $0x50] sm:$0xff] }
 0x157   : > { %1578 = vmatprep.mubr.msk.f32.mxu1 %vm793_vm1, %v1072_v22  ;;  %1574 = vmatmul.mubr.msk.f32.vlgmr.msra.gmra.mrb[4].mxu0 %vm793_vm1, %v977_v36 }
 0x158   : > { %1579 = vmatmul.mubr.msk.f32.vlgmr.msra.gmra.mrb[0].mxu1 %vm793_vm1, %v1073_v23 }
 0x159   : > { %1581 = vmatprep.mubr.msk.f32.mxu1 %vm793_vm1, %v1074_v27 }
 0x15c   : > { %1582 = vmatmul.mubr.msk.f32.gmra.mrb[2].mxu1 %vm793_vm1, %v1075_v29 }
 0x15d   : > { %1584 = vmatprep.mubr.msk.f32.mxu1 %vm793_vm1, %v1076_v31 }
 0x160   : > { %1585 = vmatmul.mubr.msk.f32.gmra.mrb[4].mxu1 %vm793_vm1, %v1077_v34 }
 0x161   : > { %1587 = vmatprep.mubr.msk.f32.mxu1 %vm793_vm1, %v1078_v35 }
 0x164   : > { %1588 = vmatmul.mubr.msk.f32.gmra.mrb[6].mxu1 %vm793_vm1, %v1079_v37 }
 0x222   : > { %v882_v44 = vpop.f32.mrb[0].mxu0 }
 0x223   : > { %v883_v46 = vadd.f32 %v882_v44, %v811_v40  ;;  %v1565_v47 = vpop.f32.mrb[1].mxu0 }
 0x225   : > { %v886_v51 = vmax.f32 %v883_v46, 0.0 }
 0x226   : > { %v967_v55 = vpop.f32.mrb[2].mxu0 }
 0x227   : > { %888 = vst.msk [vmem:[%s2045_s10] sm:$0x1] %vm887_vm4, %v886_v51  ;;  %v968_v57 = vadd.f32 %v1448_v50, %v967_v55  ;;  %v1570_v58 = vpop.f32.mrb[3].mxu0 }
 0x229   : > { %v971_v62 = vmax.f32 %v968_v57, 0.0 }
 0x22a   : > { %v1575_v2 = vpop.f32.mrb[4].mxu0 }
 0x22b   : > { %v1580_v39 = vpop.f32.mrb[0].mxu1  ;;  %973 = vst.msk [vmem:[%s2024_s7] sm:$0xf] %vm972_vm5, %v971_v62  ;;  %v1062_v4 = vadd.f32 %v1575_v2, %v1450_v61  ;;  %v1056_v5 = vpop.f32.mrb[5].mxu0 }
 0x22c   : > { %v1182_v41 = vadd.f32 %v1580_v39, %v1453_v38  ;;  %v1176_v42 = vpop.f32.mrb[1].mxu1  ;;  %v1057_v7 = vadd.f32 %v1450_v61, %v1056_v5 }
 0x22d   : > { %v1177_v43 = vadd.f32 %v1453_v38, %v1176_v42  ;;  %v1066_v9 = vmax.f32 %v1062_v4, 0.0 }
 0x22e   : > { %v1216_v45 = vmax.f32 %v1182_v41, 0.0  ;;  %v1065_v12 = vmax.f32 %v1057_v7, 0.0 }
 0x22f   : > { %v1215_v48 = vmax.f32 %v1177_v43, 0.0  ;;  %v1583_v49 = vpop.f32.mrb[2].mxu1  ;;  %1069 = vst.msk [vmem:[%s2034_s25 + $0x8] sm:$0xff] %vm1067_vm3, %v1066_v9 }
 0x230   : > { %1224 = vst.msk [vmem:[%s2039_s22 + $0x8] sm:$0xff] %vm1067_vm3, %v1216_v45  ;;  %v1192_v52 = vadd.f32 %v1583_v49, %v1453_v38  ;;  %v1186_v53 = vpop.f32.mrb[3].mxu1  ;;  %1068 = vst.msk [vmem:[%s2034_s25] sm:$0xff] %vm1067_vm3, %v1065_v12 }
 0x231   : > { %1223 = vst.msk [vmem:[%s2039_s22] sm:$0xff] %vm1067_vm3, %v1215_v48  ;;  %v1187_v54 = vadd.f32 %v1453_v38, %v1186_v53 }
 0x232   : > { %v1218_v56 = vmax.f32 %v1192_v52, 0.0 }
 0x233   : > { %v1217_v59 = vmax.f32 %v1187_v54, 0.0  ;;  %v1586_v60 = vpop.f32.mrb[4].mxu1 }
 0x234   : > { %1226 = vst.msk [vmem:[%s2039_s22 + $0x18] sm:$0xff] %vm1067_vm3, %v1218_v56  ;;  %v1202_v63 = vadd.f32 %v1586_v60, %v1453_v38  ;;  %v1196_v0 = vpop.f32.mrb[5].mxu1 }
 0x235   : > { %1225 = vst.msk [vmem:[%s2039_s22 + $0x10] sm:$0xff] %vm1067_vm3, %v1217_v59  ;;  %v1197_v1 = vadd.f32 %v1453_v38, %v1196_v0 }
 0x236   : > { %v1220_v3 = vmax.f32 %v1202_v63, 0.0 }
 0x237   : > { %v1219_v6 = vmax.f32 %v1197_v1, 0.0  ;;  %v1589_v8 = vpop.f32.mrb[6].mxu1 }
 0x238   : > { %1228 = vst.msk [vmem:[%s2039_s22 + $0x28] sm:$0xff] %vm1067_vm3, %v1220_v3  ;;  %v1212_v10 = vadd.f32 %v1589_v8, %v1453_v38  ;;  %v1206_v11 = vpop.f32.mrb[7].mxu1 }
 0x239   : > { %1227 = vst.msk [vmem:[%s2039_s22 + $0x20] sm:$0xff] %vm1067_vm3, %v1219_v6  ;;  %v1207_v13 = vadd.f32 %v1453_v38, %v1206_v11 }
 0x23a   : > { %v1222_v14 = vmax.f32 %v1212_v10, 0.0 }
 0x23b   : > { %v1221_v15 = vmax.f32 %v1207_v13, 0.0 }
 0x23c   : > { %1230 = vst.msk [vmem:[%s2039_s22 + $0x38] sm:$0xff] %vm1067_vm3, %v1222_v14 }
 0x23d   : > { %1229 = vst.msk [vmem:[%s2039_s22 + $0x30] sm:$0xff] %vm1067_vm3, %v1221_v15 }
 0x23e PF: > { %s1462_s17 = sshll.u32 %s1828_s14, 4  ;;  %s2260_s23 = sld [smem:[#allocation23_spill]] }
 0x23f   : > { %s1258_s24 = sshll.u32 %s2045_s10, 4  ;;  %s2261_s18 = sand.u32 1, %s1808_s26   ;;  %s1259_s24 = int_to_ptr.vmem [resolvable:$true] %s1258_s24 }
 0x240   : > { %s1232_s25 = scalar_lea.sflag [#allocation5], %s2261_s18  ;;  %s1730_s19 = scalar_lea.vmem %s1259_s24, 16 }
 0x241   : > { %p1731_p7 = scmp.ne.s32.totalorder %s1259_s24, %s1730_s19  ;;  %s1845_s22 = smov [#allocation4]  }
 0x242   : > { %s1734_s28 = sshll.u32 %s1845_s22, 4  ;;  %s1735_s28 = int_to_ptr.vmem [resolvable:$false] %s1734_s28 }
 0x243   : > { %p1732_p8 = pnand %p1731_p7, %p1995_p10  ;;  %s1736_s16 = scalar_lea.vmem %s1735_s28, 32 }
 0x244   : > { %s2151_s21 = scalar_lea.hbm %s2260_s23, %s1462_s17  ;;  %p1737_p11 = scmp.lt.s32.totalorder %s1259_s24, %s1735_s28 }
 0x245   : > { %p1733_p9 = pneg %p1732_p8  ;;  %p1738_p13 = scmp.lt.s32.totalorder %s1736_s16, %s1730_s19 }
 0x247   : > { %p1739_p0 = por %p1738_p13, %p1737_p11 }
 0x249   : > { %p1740_p1 = pnand %p1739_p0, %p1733_p9 }
 0x24b   : > { %1743 = shalt.err (!%p1740_p1)
}
 0x24c   : > { %s1744_s14 = scalar_lea.hbm %s2151_s21, 16  ;;  %s1748_s1 = scalar_lea.hbm %s2260_s23, 32 }
 0x24d   : > { %p1745_p2 = scmp.ne.s32.totalorder %s2151_s21, %s1744_s14  ;;  %p1749_p5 = scmp.lt.u32.totalorder %s2151_s21, %s2260_s23 }
 0x24e   : > { %p1750_p6 = scmp.lt.u32.totalorder %s1748_s1, %s1744_s14  ;;  %p1752_p8 = scmp.lt.u32.totalorder %s1744_s14, %s2151_s21 }
 0x24f   : > { %p1746_p3 = pnand %p1745_p2, %p1995_p10 }
 0x250   : > { %p1751_p7 = por %p1750_p6, %p1749_p5 }
 0x251   : > { %p1747_p4 = pneg %p1746_p3 }
 0x252   : > { %p1753_p9 = por %p1752_p8, %p1751_p7 }
 0x254   : > { %p1754_p11 = pnand %p1753_p9, %p1747_p4 }
 0x256   : > { %1757 = shalt.err (!%p1754_p11)
}
 0x257   : > { %1640 = dma.vmem_to_hbm [thread:$0]  (%p1995_p10), %s1259_s24, 16, %s2151_s21, %s1232_s25  }
 0x258 PF: > { %s2262_s27 = sld [smem:[#allocation12_spill]]  ;;  %s2263_s29 = sld [smem:[#allocation7_spill]] }
 0x25e   : > { %p1646_p13 = scmp.ge.s32.totalorder %s2262_s27, 2  ;;  %s1279_s30 = sand.u32 1, %s2263_s29  }
 0x25f   : > { %s1280_s20 = scalar_lea.sflag [#allocation5], %s1279_s30 }
 0x260   : > { %p1643_p0 = pnand %p1646_p13, %p2002_p12 }
 0x262   : > { %1799 = dma.done.wait (!%p1643_p0), %s1280_s20, 16  }
 0x263   : > { %1801 = vsyncadd (!%p1643_p0), %s1280_s20, 4294967280  ;;  %s27_s17 = sadd.s32 1, %s2262_s27   ;;  %s2265_s18 = sld [smem:[#allocation8_spill]] }
 0x264   : > { %p24_p1 = scmp.ge.s32.totalorder %s27_s17, 6   ;;  %s2266_s27 = sld [smem:[#allocation17_spill]] }
 0x265   : > { %s2267_s28 = sld [smem:[#allocation9_spill]]  ;;  %s2268_s29 = sld [smem:[#allocation15_spill]] }
 0x266   : > { %s2269_s30 = sld [smem:[#allocation10_spill]]  ;;  %s2270_s14 = sld [smem:[#allocation11_spill]] }
 0x267   : > { %s2271_s15 = sld [smem:[#allocation13_spill]]  ;;  %s2272_s16 = sld [smem:[#allocation14_spill]] }
 0x268   : > { %s2273_s25 = smov %s1808_s26  ;;  %26 = sbr.rel (!%p24_p1) target bundleno = 12 (0xc), region = 185 }
 0x269   : > { %s2274_s26 = smov %s2265_s18 }
 0x26f   :  { %1307 = vsyncpa [#allocation5], 1 }
 0x270   :  { %1309 = vsyncpa [#allocation5 + $0x1], 1 }

</bundles_post_ra>
